<compile_context>
chip_gen: v5e
topology: v5e:2x2
jax: 0.10.0
libtpu: 0.0.40
codegen_flags: <defaults>
</compile_context>

<pallas_src>
import functools

import jax
import jax.numpy as jnp
from jax import lax
from jax.experimental import pallas as pl
from jax.experimental.pallas import tpu as pltpu


# ---------------------------------------------------------------------------
# Pallas kernel: one M-tile of  (patches @ W + bias)  followed by LayerNorm
# over the embedding dim (channels-first LayerNorm of the ConvNeXt stem).
# ---------------------------------------------------------------------------
def _stem_kernel(p_ref, w_ref, params_ref, o_ref, *, n_valid, eps):
    # p_ref:      (TM, K)   bf16 patch rows
    # w_ref:      (K, Np)   bf16 projection weight (resident across the grid)
    # params_ref: (3, Np)   f32  rows = [conv bias, LN gamma, LN beta]
    # o_ref:      (TM, Np)  bf16 output (Np multiple of 128 -> lane-dense vst)
    acc = jnp.dot(p_ref[...], w_ref[...], preferred_element_type=jnp.float32)
    acc = acc + params_ref[0:1, :]                       # conv bias

    n_pad = acc.shape[-1]
    inv_n = 1.0 / n_valid
    if n_pad == n_valid:                                 # static branch (E==128 case)
        s1 = jnp.sum(acc, axis=-1, keepdims=True)
        s2 = jnp.sum(acc * acc, axis=-1, keepdims=True)
    else:                                                # mask padded lanes from stats
        mask = lax.broadcasted_iota(jnp.int32, acc.shape, 1) < n_valid
        acc_m = jnp.where(mask, acc, 0.0)
        s1 = jnp.sum(acc_m, axis=-1, keepdims=True)
        s2 = jnp.sum(acc_m * acc_m, axis=-1, keepdims=True)
    mean = s1 * inv_n
    var = jnp.maximum(s2 * inv_n - mean * mean, 0.0)     # single-pass variance
    y = (acc - mean) * lax.rsqrt(var + eps) * params_ref[1:2, :] + params_ref[2:3, :]
    o_ref[...] = y.astype(o_ref.dtype)


def _choose_tm(m, target=4096):
    """Pick the M-tile. Large tiles amortize the ~0.35us per-grid-step
    overhead; if m <= target use a single full block (block_shape == array
    dim always satisfies the (8,128) rule). Otherwise use the target (a
    multiple of 16) with a pl.cdiv grid; Pallas masks the partial tail."""
    if m <= target:
        return m
    return target


def _stem_matmul_ln(patches, w2d, bias, gamma, beta, *, eps, tm=None):
    """patches (M, K) @ w2d (K, E) + bias, then LayerNorm over E -> (M, E) bf16."""
    M, K = patches.shape
    E = w2d.shape[1]

    # Lane-dense output: pad the embedding dim up to a multiple of 128
    # (E=128 for the ConvNeXt_Base stem already satisfies this).
    n_pad = pl.cdiv(E, 128) * 128
    if n_pad != E:
        w2d = jnp.pad(w2d, ((0, 0), (0, n_pad - E)))
        bias = jnp.pad(bias, (0, n_pad - E))
        gamma = jnp.pad(gamma, (0, n_pad - E))
        beta = jnp.pad(beta, (0, n_pad - E))
    # Pack bias / gamma / beta into one resident operand (1 buffer, 1 DMA).
    params = jnp.stack([bias, gamma, beta]).astype(jnp.float32)   # (3, n_pad)

    if tm is None:
        tm = _choose_tm(M)
    grid = (pl.cdiv(M, tm),)

    kernel = functools.partial(_stem_kernel, n_valid=E, eps=eps)
    out = pl.pallas_call(
        kernel,
        out_shape=jax.ShapeDtypeStruct((M, n_pad), jnp.bfloat16),
        grid_spec=pltpu.PrefetchScalarGridSpec(
            num_scalar_prefetch=0,
            grid=grid,
            in_specs=[
                pl.BlockSpec((tm, K), lambda i: (i, 0)),
                pl.BlockSpec((K, n_pad), lambda i: (0, 0)),      # resident weight
                pl.BlockSpec((3, n_pad), lambda i: (0, 0)),      # resident params
            ],
            out_specs=pl.BlockSpec((tm, n_pad), lambda i: (i, 0)),
        ),
        compiler_params=pltpu.CompilerParams(
            dimension_semantics=("parallel",)),
    )(
        patches.astype(jnp.bfloat16),
        w2d.astype(jnp.bfloat16),
        params,
    )
    return out[:, :E] if n_pad != E else out


# ---------------------------------------------------------------------------
# ConvNeXt stem forward: Conv2d(C->E, k=patch, s=stride) + LayerNorm2d,
# returned as tokens (B, h*w, E)  ==  stem(x).flatten(2).transpose(1, 2).
# ---------------------------------------------------------------------------
def convnext_stem_forward(x, conv_weight, conv_bias, ln_gamma, ln_beta,
                          *, stride, eps=1e-6, tm=None):
    B, C, H, W = x.shape
    E, _, ph, pw = conv_weight.shape
    sh, sw = stride
    h = (H - ph) // sh + 1
    w = (W - pw) // sw + 1

    if (sh, sw) == (ph, pw) and H % ph == 0 and W % pw == 0:
        # ConvNeXt stem case: non-overlapping patches -> pure reshape/transpose
        # (no gather, no data duplication, no pad copy).
        xp = x.reshape(B, C, h, ph, w, pw)
        xp = jnp.transpose(xp, (0, 2, 4, 1, 3, 5))         # (B, h, w, C, ph, pw)
    else:
        # General (overlapping-stride) fallback: im2col gather.
        hi = (jnp.arange(h) * sh)[:, None] + jnp.arange(ph)[None, :]
        wi = (jnp.arange(w) * sw)[:, None] + jnp.arange(pw)[None, :]
        xp = x[:, :, hi, :][:, :, :, :, wi]                # (B, C, h, ph, w, pw)
        xp = jnp.transpose(xp, (0, 2, 4, 1, 3, 5))
    patches = xp.reshape(B * h * w, C * ph * pw)           # (M, K)

    # Conv weight (E, C, ph, pw) -> (K, E); same (C, ph, pw) ordering as rows.
    w2d = conv_weight.reshape(E, C * ph * pw).T

    out = _stem_matmul_ln(patches, w2d, conv_bias, ln_gamma, ln_beta,
                          eps=eps, tm=tm)
    return out.reshape(B, h * w, E)


if __name__ == "__main__":
    # Small shapes implied by the module's modified stem: Conv2d(1, 128, k4, s4).
    B, C, H, W = 2, 1, 32, 32
    patch, stride = (4, 4), (4, 4)
    E = 128
    eps = 1e-6

    key = jax.random.PRNGKey(0)
    kx, kw, kb, kg, kbeta = jax.random.split(key, 5)
    x = jax.random.normal(kx, (B, C, H, W), dtype=jnp.float32)
    conv_w = jax.random.normal(kw, (E, C, patch[0], patch[1]), jnp.float32) * 0.02
    conv_b = jax.random.normal(kb, (E,), jnp.float32) * 0.02
    ln_g = 1.0 + 0.1 * jax.random.normal(kg, (E,), jnp.float32)
    ln_b = 0.1 * jax.random.normal(kbeta, (E,), jnp.float32)

    # Reference: XLA conv with the same bf16 operands / f32 accumulation,
    # followed by channels-first LayerNorm, flattened/transposed identically,
    # then rounded to bf16 like the kernel output.
    ref = lax.conv_general_dilated(
        x.astype(jnp.bfloat16), conv_w.astype(jnp.bfloat16),
        window_strides=stride, padding="VALID",
        dimension_numbers=("NCHW", "OIHW", "NCHW"),
        preferred_element_type=jnp.float32)
    ref = ref + conv_b[None, :, None, None]
    h = (H - patch[0]) // stride[0] + 1
    w = (W - patch[1]) // stride[1] + 1
    ref = jnp.transpose(ref.reshape(B, E, h * w), (0, 2, 1))      # (B, hw, E)
    mu = ref.mean(-1, keepdims=True)
    var = ((ref - mu) ** 2).mean(-1, keepdims=True)
    ref = (ref - mu) * lax.rsqrt(var + eps) * ln_g + ln_b
    ref = ref.astype(jnp.bfloat16).astype(jnp.float32)

    # 1) Default tiling (single full block at this toy size).
    fwd = jax.jit(functools.partial(convnext_stem_forward, stride=stride, eps=eps))
    out = jax.block_until_ready(fwd(x, conv_w, conv_b, ln_g, ln_b))
    assert out.shape == (B, h * w, E), out.shape
    assert out.dtype == jnp.bfloat16, out.dtype
    err = jnp.max(jnp.abs(out.astype(jnp.float32) - ref))
    assert jnp.allclose(out.astype(jnp.float32), ref, atol=2e-2, rtol=2e-2), float(err)

    # 2) Force a non-dividing M tile (M=128, tm=48 -> blocks 48/48/32) to
    #    exercise the pl.cdiv grid + partial-last-block path once.
    fwd_partial = jax.jit(functools.partial(
        convnext_stem_forward, stride=stride, eps=eps, tm=48))
    out_p = jax.block_until_ready(fwd_partial(x, conv_w, conv_b, ln_g, ln_b))
    err_p = jnp.max(jnp.abs(out_p.astype(jnp.float32) - ref))
    assert jnp.allclose(out_p.astype(jnp.float32), ref, atol=2e-2, rtol=2e-2), float(err_p)

    print("KERNEL_OK")
</pallas_src>

<mosaic_0001>
module attributes {stable_mosaic.version = 11 : i64} {
  func.func @_stem_kernel(%arg0: i32, %arg1: memref<128x16xbf16, #tpu.memory_space<vmem>>, %arg2: memref<16x128xbf16, #tpu.memory_space<vmem>>, %arg3: memref<3x128xf32, #tpu.memory_space<vmem>>, %arg4: memref<128x128xbf16, #tpu.memory_space<vmem>>) attributes {dimension_semantics = [#tpu.dimension_semantics<parallel>], iteration_bounds = array<i64: 1>, scalar_prefetch = 0 : i64, scratch_operands = 0 : i64, tpu.core_type = #tpu.core_type<tc>, window_params = [{transform_indices = @transform_0, window_bounds = array<i64: 128, 16>}, {pipeline_mode = #tpu.pipeline_mode<synchronous>, transform_indices = @transform_1, window_bounds = array<i64: 16, 128>}, {pipeline_mode = #tpu.pipeline_mode<synchronous>, transform_indices = @transform_2, window_bounds = array<i64: 3, 128>}, {transform_indices = @transform_3, window_bounds = array<i64: 128, 128>}]} {
    %c0 = arith.constant 0 : index
    %c0_0 = arith.constant 0 : index
    %0 = vector.load %arg1[%c0, %c0_0] : memref<128x16xbf16, #tpu.memory_space<vmem>>, vector<128x16xbf16>
    %c0_1 = arith.constant 0 : index
    %c0_2 = arith.constant 0 : index
    %1 = vector.load %arg2[%c0_1, %c0_2] : memref<16x128xbf16, #tpu.memory_space<vmem>>, vector<16x128xbf16>
    %cst = arith.constant dense<0.000000e+00> : vector<128x128xf32>
    %2 = tpu.matmul %0, %1, %cst {dimension_numbers = #tpu.dot_dimension_numbers<[1], [0], [0], [1], [0, 0, 1, 1], [], []>} : vector<128x16xbf16>, vector<16x128xbf16>, vector<128x128xf32> -> vector<128x128xf32>
    %c0_3 = arith.constant 0 : index
    %c0_4 = arith.constant 0 : index
    %3 = vector.load %arg3[%c0_3, %c0_4] : memref<3x128xf32, #tpu.memory_space<vmem>>, vector<1x128xf32>
    %4 = vector.broadcast %3 : vector<1x128xf32> to vector<128x128xf32>
    %5 = arith.addf %2, %4 : vector<128x128xf32>
    %cst_5 = arith.constant dense<0.000000e+00> : vector<128xf32>
    %6 = vector.multi_reduction <add>, %5, %cst_5 [1] : vector<128x128xf32> to vector<128xf32>
    %7 = vector.shape_cast %6 : vector<128xf32> to vector<128x1xf32>
    %8 = arith.mulf %5, %5 : vector<128x128xf32>
    %cst_6 = arith.constant dense<0.000000e+00> : vector<128xf32>
    %9 = vector.multi_reduction <add>, %8, %cst_6 [1] : vector<128x128xf32> to vector<128xf32>
    %10 = vector.shape_cast %9 : vector<128xf32> to vector<128x1xf32>
    %cst_7 = arith.constant 7.812500e-03 : f32
    %11 = vector.broadcast %cst_7 : f32 to vector<128x1xf32>
    %12 = arith.mulf %7, %11 : vector<128x1xf32>
    %cst_8 = arith.constant 7.812500e-03 : f32
    %13 = vector.broadcast %cst_8 : f32 to vector<128x1xf32>
    %14 = arith.mulf %10, %13 : vector<128x1xf32>
    %15 = arith.mulf %12, %12 : vector<128x1xf32>
    %16 = arith.subf %14, %15 : vector<128x1xf32>
    %cst_9 = arith.constant 0.000000e+00 : f32
    %17 = vector.broadcast %cst_9 : f32 to vector<128x1xf32>
    %18 = arith.maximumf %16, %17 : vector<128x1xf32>
    %19 = vector.broadcast %12 : vector<128x1xf32> to vector<128x128xf32>
    %20 = arith.subf %5, %19 : vector<128x128xf32>
    %cst_10 = arith.constant 9.99999997E-7 : f32
    %21 = vector.broadcast %cst_10 : f32 to vector<128x1xf32>
    %22 = arith.addf %18, %21 : vector<128x1xf32>
    %23 = math.rsqrt %22 : vector<128x1xf32>
    %24 = vector.broadcast %23 : vector<128x1xf32> to vector<128x128xf32>
    %25 = arith.mulf %20, %24 : vector<128x128xf32>
    %c1 = arith.constant 1 : index
    %c0_11 = arith.constant 0 : index
    %26 = vector.load %arg3[%c1, %c0_11] : memref<3x128xf32, #tpu.memory_space<vmem>>, vector<1x128xf32>
    %27 = vector.broadcast %26 : vector<1x128xf32> to vector<128x128xf32>
    %28 = arith.mulf %25, %27 : vector<128x128xf32>
    %c2 = arith.constant 2 : index
    %c0_12 = arith.constant 0 : index
    %29 = vector.load %arg3[%c2, %c0_12] : memref<3x128xf32, #tpu.memory_space<vmem>>, vector<1x128xf32>
    %30 = vector.broadcast %29 : vector<1x128xf32> to vector<128x128xf32>
    %31 = arith.addf %28, %30 : vector<128x128xf32>
    %32 = arith.truncf %31 : vector<128x128xf32> to vector<128x128xbf16>
    %c0_13 = arith.constant 0 : index
    %c0_14 = arith.constant 0 : index
    %33 = vector.load %arg4[%c0_13, %c0_14] : memref<128x128xbf16, #tpu.memory_space<vmem>>, vector<128x128xbf16>
    tpu.vector_store %arg4[%c0_13, %c0_14], %32 {strides = array<i32>} : memref<128x128xbf16, #tpu.memory_space<vmem>>, vector<128x128xbf16>,
    return
  }
  func.func @transform_0(%arg0: i32) -> (i32, i32) {
    %c0_i32 = arith.constant 0 : i32
    %c0_i32_0 = arith.constant 0 : i32
    return %arg0, %c0_i32 : i32, i32
  }
  func.func @transform_1(%arg0: i32) -> (i32, i32) {
    %c0_i32 = arith.constant 0 : i32
    %c0_i32_0 = arith.constant 0 : i32
    %c0_i32_1 = arith.constant 0 : i32
    return %c0_i32, %c0_i32_0 : i32, i32
  }
  func.func @transform_2(%arg0: i32) -> (i32, i32) {
    %c0_i32 = arith.constant 0 : i32
    %c0_i32_0 = arith.constant 0 : i32
    %c0_i32_1 = arith.constant 0 : i32
    return %c0_i32, %c0_i32_0 : i32, i32
  }
  func.func @transform_3(%arg0: i32) -> (i32, i32) {
    %c0_i32 = arith.constant 0 : i32
    %c0_i32_0 = arith.constant 0 : i32
    return %arg0, %c0_i32 : i32, i32
  }
}

</mosaic_0001>

<bundles_post_ra>
// kernel: convnext_stem_forward.1
= control target key start
LH: loop header
LB: loop body
LE: loop exit
PB: predicated region body
PF: predicated region fallthrough
CT: control target
= control target key end

     0   :  { %vm82_vm0 = vcmask 130048   ;;  %s1308_s0 = inlined_call_operand.vmem [shape: bf16[128,16], index: 0, kind: input, shape index: {}]   ;;  %s1309_s1 = inlined_call_operand.vmem [shape: bf16[16,128], index: 1, kind: input, shape index: {}]   ;;  %s1310_s2 = inlined_call_operand.vmem [shape: f32[3,128], index: 2, kind: input, shape index: {}]   ;;  %s1311_s3 = inlined_call_operand.hbm [shape: bf16[128,128], index: 3, kind: output, shape index: {}]  }
   0x1   :  { %v662_v0 = vld [vmem:[%s1309_s1] sm:$0xff]  ;;  %v656_v2 = vld [vmem:[%s1308_s0 + $0x10] sm:$0xff] }
   0x2   :  { %v654_v1 = vld [vmem:[%s1308_s0] sm:$0xff]  ;;  %114 = vmatpush.bf16.msra.mxu0 %v662_v0  ;;  %710 = vmatpush.bf16.msra.mxu1 %v662_v0  ;;  %v660_v3 = vld [vmem:[%s1308_s0 + $0x30] sm:$0xff] }
   0x3   :  { %v658_v4 = vld [vmem:[%s1308_s0 + $0x20] sm:$0xff]  ;;  %712 = vmatpush.bf16.msra.mxu3 %v662_v0  ;;  %711 = vmatpush.bf16.msra.mxu2 %v662_v0 }
   0x4   :  { %8 = vsyncpa [#allocation3], 0  ;;  %v655_v5 = vld [vmem:[%s1308_s0 + $0x8] sm:$0xff]  ;;  %v657_v6 = vld [vmem:[%s1308_s0 + $0x18] sm:$0xff]  ;;  %s598_s10 = sshll.u32 %s1311_s3, 4  ;;  %s778_s11 = smov 64   ;;  %s599_s10 = int_to_ptr.hbm [resolvable:$true] %s598_s10 }
   0x5   :  { %646 = vmatmul.msk.bf16.vlgmr.msra.gmra.mxu0 %vm82_vm0, %v654_v1  ;;  %648 = vmatmul.msk.bf16.vlgmr.msra.gmra.mxu1 %vm82_vm0, %v656_v2  ;;  %v661_v7 = vld [vmem:[%s1308_s0 + $0x38] sm:$0xff]  ;;  %v659_v8 = vld [vmem:[%s1308_s0 + $0x28] sm:$0xff]  ;;  %v838_v9 = vld [vmem:[%s1310_s2] ss:$0 sm:$0xff]  ;;  %s779_s12 = smov 4  }
   0x6   :  { %652 = vmatmul.msk.bf16.vlgmr.msra.gmra.mxu3 %vm82_vm0, %v660_v3  ;;  %650 = vmatmul.msk.bf16.vlgmr.msra.gmra.mxu2 %vm82_vm0, %v658_v4 }
  0x15   :  { %647 = vmatmul.msk.bf16.gmra.mxu0 %vm82_vm0, %v655_v5  ;;  %649 = vmatmul.msk.bf16.gmra.mxu1 %vm82_vm0, %v657_v6 }
  0x16   :  { %653 = vmatmul.msk.bf16.gmra.mxu3 %vm82_vm0, %v661_v7  ;;  %651 = vmatmul.msk.bf16.gmra.mxu2 %vm82_vm0, %v659_v8 }
  0x82   :  { %v116_v10 = vpop.f32.mrf.mxu0  ;;  %v126_v11 = vpop.f32.mrf.mxu1 }
  0x83   :  { %v841_v12 = vadd.f32 %v838_v9, %v116_v10  ;;  %v844_v13 = vadd.f32 %v838_v9, %v126_v11 }
  0x85   :  { %164 = vadd.xlane.f32.xlu2 %v844_v13  ;;  %156 = vadd.xlane.f32.xlu0 %v841_v12  ;;  %v188_v14 = vmul.f32 %v841_v12, %v841_v12  ;;  %v192_v16 = vmul.f32 %v844_v13, %v844_v13 }
  0x87   :  { %204 = vadd.xlane.f32.xlu1 %v188_v14 }
  0x89   :  { %v146_v15 = vpop.f32.mrf.mxu3  ;;  %v136_v19 = vpop.f32.mrf.mxu2 }
  0x8a   :  { %v853_v17 = vadd.f32 %v838_v9, %v146_v15  ;;  %v118_v20 = vpop.f32.mrf.mxu0  ;;  %v859_v21 = vadd.f32 %v838_v9, %v136_v19  ;;  %v128_v25 = vpop.f32.mrf.mxu1 }
  0x8b   :  { %v862_v23 = vadd.f32 %v838_v9, %v118_v20  ;;  %v873_v28 = vadd.f32 %v838_v9, %v128_v25 }
  0x8c   :  { %v200_v18 = vmul.f32 %v853_v17, %v853_v17  ;;  %v196_v26 = vmul.f32 %v859_v21, %v859_v21 }
  0x8d   :  { %212 = vadd.xlane.f32.xlu2 %v192_v16  ;;  %180 = vadd.xlane.f32.xlu0 %v853_v17  ;;  %v189_v32 = vmul.f32 %v862_v23, %v862_v23  ;;  %v193_v33 = vmul.f32 %v873_v28, %v873_v28 }
  0x8f   :  { %228 = vadd.xlane.f32.xlu1 %v200_v18 }
  0x91   :  { %v148_v22 = vpop.f32.mrf.mxu3  ;;  %v138_v30 = vpop.f32.mrf.mxu2 }
  0x92   :  { %v865_v24 = vadd.f32 %v838_v9, %v148_v22  ;;  %v121_v27 = vpop.f32.mrf.mxu0  ;;  %v881_v31 = vadd.f32 %v838_v9, %v138_v30  ;;  %v131_v35 = vpop.f32.mrf.mxu1 }
  0x93   :  { %v876_v29 = vadd.f32 %v838_v9, %v121_v27  ;;  %v890_v37 = vadd.f32 %v838_v9, %v131_v35 }
  0x94   :  { %v197_v34 = vmul.f32 %v881_v31, %v881_v31  ;;  %v201_v53 = vmul.f32 %v865_v24, %v865_v24 }
  0x95   :  { %172 = vadd.xlane.f32.xlu2 %v859_v21  ;;  %158 = vadd.xlane.f32.xlu0 %v862_v23  ;;  %v194_v39 = vmul.f32 %v890_v37, %v890_v37  ;;  %v190_v47 = vmul.f32 %v876_v29, %v876_v29 }
  0x97   :  { %182 = vadd.xlane.f32.xlu1 %v865_v24 }
  0x99   :  { %v151_v36 = vpop.f32.mrf.mxu3  ;;  %v141_v40 = vpop.f32.mrf.mxu2 }
  0x9a   :  { %v893_v38 = vadd.f32 %v838_v9, %v151_v36  ;;  %v898_v41 = vadd.f32 %v838_v9, %v141_v40  ;;  %v133_v43 = vpop.f32.mrf.mxu1  ;;  %v123_v45 = vpop.f32.mrf.mxu0 }
  0x9b   :  { %v906_v44 = vadd.f32 %v838_v9, %v133_v43  ;;  %v914_v48 = vadd.f32 %v838_v9, %v123_v45 }
  0x9c   :  { %v198_v42 = vmul.f32 %v898_v41, %v898_v41  ;;  %v202_v56 = vmul.f32 %v893_v38, %v893_v38 }
  0x9d   :  { %166 = vadd.xlane.f32.xlu2 %v873_v28  ;;  %220 = vadd.xlane.f32.xlu0 %v196_v26  ;;  %v195_v46 = vmul.f32 %v906_v44, %v906_v44  ;;  %v191_v55 = vmul.f32 %v914_v48, %v914_v48 }
  0x9f   :  { %160 = vadd.xlane.f32.xlu1 %v876_v29 }
  0xa1   :  { %v143_v49 = vpop.f32.mrf.mxu2  ;;  %v153_v50 = vpop.f32.mrf.mxu3 }
  0xa2   :  { %v918_v51 = vadd.f32 %v838_v9, %v143_v49  ;;  %v921_v52 = vadd.f32 %v838_v9, %v153_v50 }
  0xa4   :  { %v199_v54 = vmul.f32 %v918_v51, %v918_v51  ;;  %v203_v57 = vmul.f32 %v921_v52, %v921_v52 }
  0xa5   :  { %206 = vadd.xlane.f32.xlu2 %v189_v32  ;;  %214 = vadd.xlane.f32.xlu0 %v193_v33 }
  0xa7   :  { %222 = vadd.xlane.f32.xlu1 %v197_v34 }
  0xad   :  { %184 = vadd.xlane.f32.xlu2 %v893_v38  ;;  %174 = vadd.xlane.f32.xlu0 %v881_v31 }
  0xaf   :  { %216 = vadd.xlane.f32.xlu1 %v194_v39 }
  0xb5   :  { %224 = vadd.xlane.f32.xlu2 %v198_v42  ;;  %168 = vadd.xlane.f32.xlu0 %v890_v37 }
  0xb7   :  { %176 = vadd.xlane.f32.xlu1 %v898_v41 }
  0xbd   :  { %218 = vadd.xlane.f32.xlu2 %v195_v46  ;;  %208 = vadd.xlane.f32.xlu0 %v190_v47 }
  0xbf   :  { %162 = vadd.xlane.f32.xlu1 %v914_v48 }
  0xc5   :  { %178 = vadd.xlane.f32.xlu2 %v918_v51  ;;  %186 = vadd.xlane.f32.xlu0 %v921_v52 }
  0xc7   :  { %170 = vadd.xlane.f32.xlu1 %v906_v44 }
  0xcd   :  { %230 = vadd.xlane.f32.xlu2 %v201_v53  ;;  %226 = vadd.xlane.f32.xlu0 %v199_v54 }
  0xcf   :  { %210 = vadd.xlane.f32.xlu1 %v191_v55 }
  0xd5   :  { %232 = vadd.xlane.f32.xlu0 %v202_v56 }
  0xd7   :  { %234 = vadd.xlane.f32.xlu1 %v203_v57 }
  0xf8   :  { %v165_v58 = vpop.xlane.xlu2 %164  ;;  %v157_v59 = vpop.xlane.xlu0 %156 }
  0xf9   :  { %v936_v60 = vmul.f32 0.0078125, %v157_v59  ;;  %v940_v0 = vmul.f32 0.0078125, %v165_v58 }
  0xfa   :  { %v205_v61 = vpop.xlane.xlu1 %204 }
  0xfb   :  { %v268_v62 = vmul.f32 %v936_v60, %v936_v60  ;;  %v252_v63 = vmul.f32 0.0078125, %v205_v61  ;;  %v272_v2 = vmul.f32 %v940_v0, %v940_v0 }
  0xfd   :  { %v284_v1 = vsub.f32 %v252_v63, %v268_v62 }
  0xff   :  { %v300_v6 = vmax.f32 %v284_v1, 0.0 }
 0x100   :  { %v213_v3 = vpop.xlane.xlu2 %212  ;;  %v181_v4 = vpop.xlane.xlu0 %180 }
 0x101   :  { %v256_v5 = vmul.f32 0.0078125, %v213_v3  ;;  %v944_v9 = vmul.f32 0.0078125, %v181_v4  ;;  %v946_v10 = vadd.f32 1e-06, %v300_v6 }
 0x102   :  { %v229_v7 = vpop.xlane.xlu1 %228 }
 0x103   :  { %v288_v8 = vsub.f32 %v256_v5, %v272_v2  ;;  %v280_v14 = vmul.f32 %v944_v9, %v944_v9  ;;  %v264_v15 = vmul.f32 0.0078125, %v229_v7  ;;  %719 = vrsqrt.f32 %v946_v10 }
 0x104   :  { %vm354_vm2 = vweird.f32 %v946_v10 }
 0x105   :  { %v304_v11 = vmax.f32 %v288_v8, 0.0  ;;  %v296_v22 = vsub.f32 %v264_v15, %v280_v14 }
 0x107   :  { %v953_v20 = vadd.f32 1e-06, %v304_v11  ;;  %v312_v30 = vmax.f32 %v296_v22, 0.0 }
 0x108   :  { %v173_v16 = vpop.xlane.xlu2 %172  ;;  %v159_v18 = vpop.xlane.xlu0 %158 }
 0x109   :  { %v955_v25 = vmul.f32 0.0078125, %v173_v16  ;;  %v959_v27 = vpop.eup %719  ;;  %721 = vrsqrt.f32 %v953_v20  ;;  %v966_v40 = vadd.f32 1e-06, %v312_v30  ;;  %v968_v42 = vmul.f32 0.0078125, %v159_v18 }
 0x10a   :  { %v951_v19 = vpop.xlane.xlu1 %182  ;;  %v349_v36 = vmul.f32 %v959_v27, %v946_v10  ;;  %vm355_vm1 = vweird.f32 %v959_v27  ;;  %vm394_vm4 = vweird.f32 %v953_v20 }
 0x10b   :  { %v276_v26 = vmul.f32 %v955_v25, %v955_v25  ;;  %723 = vrsqrt.f32 %v966_v40  ;;  %v269_v50 = vmul.f32 %v968_v42, %v968_v42  ;;  %vm1013_vm3 = vmor %vm354_vm2, %vm355_vm1  ;;  %vm474_vm2 = vweird.f32 %v966_v40 }
 0x10c   :  { %v350_v47 = vmul.f32 %v959_v27, %v349_v36  ;;  %v320_v36 = vsub.f32 %v844_v13, %v940_v0  ;;  %v317_v13 = vsub.f32 %v862_v23, %v968_v42 }
 0x10e   :  { %v351_v61 = vmul.f32 0.5, %v350_v47 }
 0x10f   :  { %v972_v46 = vpop.eup %721 }
 0x110   :  { %v167_v32 = vpop.xlane.xlu2 %166  ;;  %v221_v33 = vpop.xlane.xlu0 %220  ;;  %v389_v55 = vmul.f32 %v972_v46, %v953_v20  ;;  %v352_v5 = vsub.f32 1.5, %v351_v61  ;;  %vm395_vm5 = vweird.f32 %v972_v46 }
 0x111   :  { %v260_v34 = vmul.f32 0.0078125, %v221_v33  ;;  %v970_v43 = vmul.f32 0.0078125, %v167_v32  ;;  %v986_v4 = vpop.eup %723  ;;  %vm1059_vm6 = vmor %vm394_vm4, %vm395_vm5 }
 0x112   :  { %v962_v35 = vpop.xlane.xlu1 %160  ;;  %v390_v1 = vmul.f32 %v972_v46, %v389_v55  ;;  %v469_v16 = vmul.f32 %v986_v4, %v966_v40  ;;  %vm475_vm0 = vweird.f32 %v986_v4 }
 0x113   :  { %v292_v39 = vsub.f32 %v260_v34, %v276_v26  ;;  %v273_v56 = vmul.f32 %v970_v43, %v970_v43  ;;  %v353_v26 = vmul.f32 %v959_v27, %v352_v5  ;;  %v321_v0 = vsub.f32 %v873_v28, %v970_v43  ;;  %v1045_v28 = vld [vmem:[%s1310_s2 + $0x1] ss:$0 sm:$0xff] }
 0x114   :  { %v391_v15 = vmul.f32 0.5, %v390_v1  ;;  %v470_v47 = vmul.f32 %v986_v4, %v469_v16 }
 0x115   :  { %v308_v45 = vmax.f32 %v292_v39, 0.0  ;;  %v316_v39 = vsub.f32 %v841_v12, %v936_v60  ;;  %v357_v10 = vsel %vm1013_vm3, %v959_v27, %v353_v26  ;;  %vm1132_vm3 = vmor %vm474_vm2, %vm475_vm0 }
 0x116   :  { %v392_v34 = vsub.f32 1.5, %v391_v15 }
 0x117   :  { %v975_v49 = vadd.f32 1e-06, %v308_v45  ;;  %v508_v43 = vmul.f32 %v357_v10, %v316_v39 }
 0x118   :  { %v207_v53 = vpop.xlane.xlu2 %206  ;;  %v215_v54 = vpop.xlane.xlu0 %214 }
 0x119   :  { %v253_v57 = vmul.f32 0.0078125, %v207_v53  ;;  %v257_v58 = vmul.f32 0.0078125, %v215_v54  ;;  %725 = vrsqrt.f32 %v975_v49  ;;  %v526_v20 = vmul.f32 %v1045_v28, %v508_v43 }
 0x11a   :  { %v223_v59 = vpop.xlane.xlu1 %222  ;;  %vm434_vm14 = vweird.f32 %v975_v49 }
 0x11b   :  { %v285_v62 = vsub.f32 %v253_v57, %v269_v50  ;;  %v289_v63 = vsub.f32 %v257_v58, %v273_v56  ;;  %v261_v32 = vmul.f32 0.0078125, %v223_v59  ;;  %v393_v57 = vmul.f32 %v972_v46, %v392_v34 }
 0x11c   :  { %v1036_v58 = vmul.f32 0.0078125, %v962_v35  ;;  %v1047_v59 = vmul.f32 0.5, %v470_v47 }
 0x11d   :  { %v301_v2 = vmax.f32 %v285_v62, 0.0  ;;  %v305_v3 = vmax.f32 %v289_v63, 0.0 }
 0x11e   :  { %v270_v26 = vmul.f32 %v1036_v58, %v1036_v58 }
 0x11f   :  { %v988_v6 = vadd.f32 1e-06, %v301_v2  ;;  %v990_v7 = vadd.f32 1e-06, %v305_v3  ;;  %v992_v8 = vpop.eup %725 }
 0x120   :  { %v994_v11 = vpop.xlane.xlu2 %184  ;;  %v175_v14 = vpop.xlane.xlu0 %174  ;;  %v429_v30 = vmul.f32 %v992_v8, %v975_v49  ;;  %vm435_vm12 = vweird.f32 %v992_v8 }
 0x121   :  { %727 = vrsqrt.f32 %v988_v6  ;;  %v1000_v18 = vmul.f32 0.0078125, %v175_v14  ;;  %vm364_vm9 = vweird.f32 %v988_v6  ;;  %vm404_vm11 = vweird.f32 %v990_v7  ;;  %vm1110_vm15 = vmor %vm434_vm14, %vm435_vm12 }
 0x122   :  { %729 = vrsqrt.f32 %v990_v7  ;;  %v217_v22 = vpop.xlane.xlu1 %216  ;;  %v430_v12 = vmul.f32 %v992_v8, %v429_v30 }
 0x123   :  { %v277_v33 = vmul.f32 %v1000_v18, %v1000_v18  ;;  %v258_v2 = vmul.f32 0.0078125, %v217_v22  ;;  %v397_v22 = vsel %vm1059_vm6, %v972_v46, %v393_v57 }
 0x124   :  { %v431_v35 = vmul.f32 0.5, %v430_v12 }
 0x125   :  { %v293_v50 = vsub.f32 %v261_v32, %v277_v33 }
 0x126   :  { %v432_v39 = vsub.f32 1.5, %v431_v35 }
 0x127   :  { %v1018_v53 = vpop.eup %727  ;;  %v309_v55 = vmax.f32 %v293_v50, 0.0  ;;  %v512_v50 = vmul.f32 %v397_v22, %v320_v36  ;;  %v1087_v36 = vld [vmem:[%s1310_s2 + $0x2] ss:$0 sm:$0xff]  ;;  %s777_s2 = smov [#allocation2]  }
 0x128   :  { %v1027_v60 = vpop.eup %729  ;;  %v359_v54 = vmul.f32 %v1018_v53, %v988_v6  ;;  %v225_v56 = vpop.xlane.xlu2 %224  ;;  %vm365_vm7 = vweird.f32 %v1018_v53  ;;  %v472_v6 = vsub.f32 1.5, %v1047_v59  ;;  %s596_s7 = sshll.u32 %s777_s2, 4  ;;  %s597_s7 = int_to_ptr.vmem [resolvable:$true] %s596_s7 }
 0x129   :  { %v169_v27 = vpop.xlane.xlu0 %168  ;;  %v399_v23 = vmul.f32 %v1027_v60, %v990_v7  ;;  %v1050_v62 = vadd.f32 1e-06, %v309_v55  ;;  %v262_v15 = vmul.f32 0.0078125, %v225_v56  ;;  %vm405_vm8 = vweird.f32 %v1027_v60  ;;  %vm366_vm10 = vmor %vm364_vm9, %vm365_vm7 }
 0x12a   :  { %v1040_v42 = vmul.f32 0.0078125, %v169_v27  ;;  %v360_v61 = vmul.f32 %v1018_v53, %v359_v54  ;;  %v177_v63 = vpop.xlane.xlu1 %176  ;;  %vm406_vm13 = vmor %vm404_vm11, %vm405_vm8 }
 0x12b   :  { %v400_v1 = vmul.f32 %v1027_v60, %v399_v23  ;;  %731 = vrsqrt.f32 %v1050_v62  ;;  %v1064_v16 = vmul.f32 0.0078125, %v177_v63  ;;  %vm444_vm4 = vweird.f32 %v1050_v62 }
 0x12c   :  { %v274_v3 = vmul.f32 %v1040_v42, %v1040_v42  ;;  %v361_v14 = vmul.f32 0.5, %v360_v61  ;;  %v433_v61 = vmul.f32 %v992_v8, %v432_v39 }
 0x12d   :  { %v401_v30 = vmul.f32 0.5, %v400_v1  ;;  %v278_v34 = vmul.f32 %v1064_v16, %v1064_v16 }
 0x12e   :  { %v290_v32 = vsub.f32 %v258_v2, %v274_v3  ;;  %v362_v33 = vsub.f32 1.5, %v361_v14  ;;  %v530_v2 = vmul.f32 %v1045_v28, %v512_v50  ;;  %v437_v49 = vsel %vm1110_vm15, %v992_v8, %v433_v61 }
 0x12f   :  { %v402_v45 = vsub.f32 1.5, %v401_v30  ;;  %v294_v10 = vsub.f32 %v262_v15, %v278_v34  ;;  %v544_v15 = vadd.f32 %v1087_v36, %v526_v20 }
 0x130   :  { %v306_v47 = vmax.f32 %v290_v32, 0.0  ;;  %v363_v46 = vmul.f32 %v1018_v53, %v362_v33  ;;  %v1078_v12 = vpop.xlane.xlu2 %218 }
 0x131   :  { %v209_v54 = vpop.xlane.xlu0 %208  ;;  %v403_v55 = vmul.f32 %v1027_v60, %v402_v45  ;;  %v732_v57 = vpop.eup %731  ;;  %v310_v43 = vmax.f32 %v294_v10, 0.0 }
 0x132   :  { %v1082_v56 = vadd.f32 1e-06, %v306_v47  ;;  %v254_v27 = vmul.f32 0.0078125, %v209_v54  ;;  %v367_v23 = vsel %vm366_vm10, %v1018_v53, %v363_v46  ;;  %v1094_v7 = vpop.xlane.xlu1 %162  ;;  %v439_v1 = vmul.f32 %v732_v57, %v1050_v62 }
 0x133   :  { %v509_v63 = vmul.f32 %v367_v23, %v317_v13  ;;  %v407_v35 = vsel %vm406_vm13, %v1027_v60, %v403_v55  ;;  %v1101_v3 = vadd.f32 1e-06, %v310_v43  ;;  %v324_v13 = vsub.f32 %v859_v21, %v955_v25 }
 0x134   :  { %v513_v59 = vmul.f32 %v407_v35, %v321_v0  ;;  %733 = vrsqrt.f32 %v1082_v56  ;;  %v440_v5 = vmul.f32 %v732_v57, %v439_v1  ;;  %v286_v14 = vsub.f32 %v254_v27, %v270_v26 }
 0x135   :  { %v527_v53 = vmul.f32 %v1045_v28, %v509_v63  ;;  %735 = vrsqrt.f32 %v1101_v3  ;;  %v548_v21 = vadd.f32 %v1087_v36, %v530_v2  ;;  %v473_v25 = vmul.f32 %v986_v4, %v472_v6 }
 0x136   :  { %v531_v0 = vmul.f32 %v1045_v28, %v513_v59  ;;  %v441_v26 = vmul.f32 0.5, %v440_v5  ;;  %v302_v30 = vmax.f32 %v286_v14, 0.0  ;;  %vm445_vm1 = vweird.f32 %v732_v57 }
 0x137   :  { %v545_v22 = vadd.f32 %v1087_v36, %v527_v53  ;;  %v1130_v47 = vmul.f32 0.0078125, %v951_v19  ;;  %v516_v50 = vmul.f32 %v437_v49, %v324_v13  ;;  %v328_v19 = vsub.f32 %v853_v17, %v944_v9  ;;  %vm446_vm5 = vmor %vm444_vm4, %vm445_vm1 }
 0x138   :  { %v549_v32 = vadd.f32 %v1087_v36, %v531_v0  ;;  %v179_v20 = vpop.xlane.xlu2 %178  ;;  %v442_v39 = vsub.f32 1.5, %v441_v26  ;;  %v1124_v45 = vadd.f32 1e-06, %v302_v30  ;;  %v325_v6 = vsub.f32 %v881_v31, %v1000_v18 }
 0x139   :  { %v187_v33 = vpop.xlane.xlu0 %186  ;;  %v666_v34 = vpack.c.bf16 %v545_v22, %v544_v15  ;;  %v477_v62 = vsel %vm1132_vm3, %v986_v4, %v473_v25  ;;  %v1151_v61 = vmul.f32 0.0078125, %v179_v20  ;;  %v534_v63 = vmul.f32 %v1045_v28, %v516_v50 }
 0x13a   :  { %v1126_v8 = vpop.eup %733  ;;  %v676_v46 = vpack.c.bf16 %v549_v32, %v548_v21  ;;  %v171_v10 = vpop.xlane.xlu1 %170  ;;  %v443_v55 = vmul.f32 %v732_v57, %v442_v39  ;;  %737 = vrsqrt.f32 %v1124_v45  ;;  %v281_v31 = vmul.f32 %v1130_v47, %v1130_v47 }
 0x13b   :  { %667 = vst [vmem:[#allocation2] sm:$0xff] %v666_v34   ;;  %v409_v27 = vmul.f32 %v1126_v8, %v1082_v56  ;;  %v1140_v40 = vpop.eup %735  ;;  %v1156_v9 = vmul.f32 0.0078125, %v171_v10  ;;  %v520_v1 = vmul.f32 %v477_v62, %v328_v19  ;;  %v1167_v14 = vmul.f32 0.0078125, %v1094_v7 }
 0x13c   :  { %704 = vst [vmem:[#allocation2 + $0x10] sm:$0xff] %v676_v46   ;;  %v447_v23 = vsel %vm446_vm5, %v732_v57, %v443_v55  ;;  %v449_v17 = vmul.f32 %v1140_v40, %v1101_v3  ;;  %v259_v57 = vmul.f32 0.0078125, %v1078_v12  ;;  %v279_v15 = vmul.f32 %v1151_v61, %v1151_v61 }
 0x13d   :  { %v410_v43 = vmul.f32 %v1126_v8, %v409_v27  ;;  %v517_v35 = vmul.f32 %v447_v23, %v325_v6  ;;  %v275_v2 = vmul.f32 %v1156_v9, %v1156_v9  ;;  %v552_v0 = vadd.f32 %v1087_v36, %v534_v63 }
 0x13e   :  { %v450_v12 = vmul.f32 %v1140_v40, %v449_v17  ;;  %v271_v39 = vmul.f32 %v1167_v14, %v1167_v14  ;;  %v538_v10 = vmul.f32 %v1045_v28, %v520_v1  ;;  %v1181_v27 = vmul.f32 0.0078125, %v187_v33 }
 0x13f   :  { %v411_v18 = vmul.f32 0.5, %v410_v43  ;;  %v535_v4 = vmul.f32 %v1045_v28, %v517_v35  ;;  %v291_v22 = vsub.f32 %v259_v57, %v275_v2  ;;  %vm415_vm6 = vweird.f32 %v1126_v8 }
 0x140   :  { %v231_v59 = vpop.xlane.xlu2 %230  ;;  %v1164_v5 = vpop.eup %737  ;;  %v451_v54 = vmul.f32 0.5, %v450_v12  ;;  %v329_v35 = vsub.f32 %v865_v24, %v1130_v47  ;;  %v1194_v33 = vmul.f32 0.0078125, %v994_v11  ;;  %v318_v17 = vsub.f32 %v876_v29, %v1036_v58 }
 0x141   :  { %v227_v53 = vpop.xlane.xlu0 %226  ;;  %v265_v13 = vmul.f32 0.0078125, %v231_v59  ;;  %v553_v49 = vadd.f32 %v1087_v36, %v535_v4  ;;  %v412_v30 = vsub.f32 1.5, %v411_v18  ;;  %v369_v7 = vmul.f32 %v1164_v5, %v1124_v45 }
 0x142   :  { %v263_v60 = vmul.f32 0.0078125, %v227_v53  ;;  %v211_v26 = vpop.xlane.xlu1 %210  ;;  %v307_v20 = vmax.f32 %v291_v22, 0.0  ;;  %vm414_vm7 = vweird.f32 %v1082_v56  ;;  %v282_v1 = vmul.f32 %v1194_v33, %v1194_v33 }
 0x143   :  { %v297_v21 = vsub.f32 %v265_v13, %v281_v31  ;;  %v686_v32 = vpack.c.bf16 %v553_v49, %v552_v0  ;;  %v255_v34 = vmul.f32 0.0078125, %v211_v26  ;;  %v413_v23 = vmul.f32 %v1126_v8, %v412_v30  ;;  %vm1203_vm8 = vmor %vm414_vm7, %vm415_vm6 }
 0x144   :  { %v295_v25 = vsub.f32 %v263_v60, %v279_v15  ;;  %v1179_v55 = vadd.f32 1e-06, %v307_v20  ;;  %v370_v43 = vmul.f32 %v1164_v5, %v369_v7  ;;  %v452_v31 = vsub.f32 1.5, %v451_v54 }
 0x145   :  { %v313_v50 = vmax.f32 %v297_v21, 0.0  ;;  %706 = vst [vmem:[#allocation2 + $0x20] sm:$0xff] %v686_v32   ;;  %v287_v62 = vsub.f32 %v255_v34, %v271_v39  ;;  %v1208_v59 = vadd.f32 %v1087_v36, %v538_v10  ;;  %v417_v56 = vsel %vm1203_vm8, %v1126_v8, %v413_v23 }
 0x146   :  { %v311_v46 = vmax.f32 %v295_v25, 0.0  ;;  %739 = vrsqrt.f32 %v1179_v55  ;;  %v371_v53 = vmul.f32 0.5, %v370_v43  ;;  %v283_v15 = vmul.f32 %v1181_v27, %v1181_v27 }
 0x147   :  { %v1183_v19 = vadd.f32 1e-06, %v313_v50  ;;  %v303_v11 = vmax.f32 %v287_v62, 0.0  ;;  %v322_v13 = vsub.f32 %v890_v37, %v1040_v42  ;;  %v326_v60 = vsub.f32 %v898_v41, %v1064_v16 }
 0x148   :  { %v1185_v6 = vadd.f32 1e-06, %v311_v46  ;;  %v453_v22 = vmul.f32 %v1140_v40, %v452_v31  ;;  %vm454_vm9 = vweird.f32 %v1101_v3  ;;  %vm455_vm10 = vweird.f32 %v1140_v40 }
 0x149   :  { %v233_v63 = vpop.xlane.xlu0 %232  ;;  %741 = vrsqrt.f32 %v1183_v19  ;;  %v1219_v0 = vadd.f32 1e-06, %v303_v11  ;;  %v514_v30 = vmul.f32 %v417_v56, %v322_v13  ;;  %v319_v21 = vsub.f32 %v914_v48, %v1167_v14  ;;  %vm1230_vm12 = vmor %vm454_vm9, %vm455_vm10 }
 0x14a   :  { %743 = vrsqrt.f32 %v1185_v6  ;;  %v235_v18 = vpop.xlane.xlu1 %234  ;;  %v266_v57 = vmul.f32 0.0078125, %v233_v63  ;;  %v372_v42 = vsub.f32 1.5, %v371_v53  ;;  %vm374_vm11 = vweird.f32 %v1124_v45 }
 0x14b   :  { %v267_v2 = vmul.f32 0.0078125, %v235_v18  ;;  %745 = vrsqrt.f32 %v1219_v0  ;;  %v327_v32 = vsub.f32 %v918_v51, %v1151_v61  ;;  %v323_v7 = vsub.f32 %v906_v44, %v1156_v9 }
 0x14c   :  { %v298_v49 = vsub.f32 %v266_v57, %v282_v1  ;;  %v740_v12 = vpop.eup %739  ;;  %v457_v39 = vsel %vm1230_vm12, %v1140_v40, %v453_v22  ;;  %v532_v54 = vmul.f32 %v1045_v28, %v514_v30  ;;  %vm375_vm13 = vweird.f32 %v1164_v5 }
 0x14d   :  { %v299_v8 = vsub.f32 %v267_v2, %v283_v15  ;;  %v419_v37 = vmul.f32 %v740_v12, %v1179_v55  ;;  %v373_v61 = vmul.f32 %v1164_v5, %v372_v42  ;;  %v518_v43 = vmul.f32 %v457_v39, %v326_v60  ;;  %vm1256_vm0 = vmor %vm374_vm11, %vm375_vm13 }
 0x14e   :  { %v314_v25 = vmax.f32 %v298_v49, 0.0  ;;  %vm425_vm14 = vweird.f32 %v740_v12  ;;  %vm424_vm1 = vweird.f32 %v1179_v55  ;;  %vm484_vm4 = vweird.f32 %v1183_v19 }
 0x14f   :  { %v742_v26 = vpop.eup %741  ;;  %v420_v20 = vmul.f32 %v740_v12, %v419_v37  ;;  %v315_v10 = vmax.f32 %v299_v8, 0.0  ;;  %v377_v57 = vsel %vm1256_vm0, %v1164_v5, %v373_v61  ;;  %vm426_vm3 = vmor %vm424_vm1, %vm425_vm14  ;;  %v536_v45 = vmul.f32 %v1045_v28, %v518_v43 }
 0x150   :  { %v744_v41 = vpop.eup %743  ;;  %v479_v16 = vmul.f32 %v742_v26, %v1183_v19  ;;  %v1242_v46 = vadd.f32 1e-06, %v314_v25  ;;  %vm485_vm15 = vweird.f32 %v742_v26  ;;  %vm464_vm6 = vweird.f32 %v1185_v6 }
 0x151   :  { %v459_v34 = vmul.f32 %v744_v41, %v1185_v6  ;;  %v421_v62 = vmul.f32 0.5, %v420_v20  ;;  %v1248_v9 = vadd.f32 1e-06, %v315_v10  ;;  %v746_v23 = vpop.eup %745  ;;  %vm465_vm2 = vweird.f32 %v744_v41  ;;  %vm486_vm5 = vmor %vm484_vm4, %vm485_vm15 }
 0x152   :  { %v480_v50 = vmul.f32 %v742_v26, %v479_v16  ;;  %747 = vrsqrt.f32 %v1242_v46  ;;  %v379_v18 = vmul.f32 %v746_v23, %v1219_v0  ;;  %v550_v13 = vadd.f32 %v1087_v36, %v532_v54  ;;  %vm466_vm7 = vmor %vm464_vm6, %vm465_vm2 }
 0x153   :  { %v460_v51 = vmul.f32 %v744_v41, %v459_v34  ;;  %v422_v40 = vsub.f32 1.5, %v421_v62  ;;  %749 = vrsqrt.f32 %v1248_v9  ;;  %v510_v19 = vmul.f32 %v377_v57, %v318_v17 }
 0x154   :  { %v481_v44 = vmul.f32 0.5, %v480_v50  ;;  %v380_v56 = vmul.f32 %v746_v23, %v379_v18  ;;  %vm385_vm8 = vweird.f32 %v746_v23  ;;  %vm384_vm9 = vweird.f32 %v1219_v0 }
 0x155   :  { %v461_v63 = vmul.f32 0.5, %v460_v51  ;;  %v423_v4 = vmul.f32 %v740_v12, %v422_v40  ;;  %vm386_vm10 = vmor %vm384_vm9, %vm385_vm8  ;;  %vm494_vm12 = vweird.f32 %v1242_v46  ;;  %v330_v61 = vsub.f32 %v893_v38, %v1194_v33 }
 0x156   :  { %v482_v31 = vsub.f32 1.5, %v481_v44  ;;  %v381_v5 = vmul.f32 0.5, %v380_v56  ;;  %vm504_vm15 = vweird.f32 %v1248_v9 }
 0x157   :  { %v462_v11 = vsub.f32 1.5, %v461_v63  ;;  %v427_v53 = vsel %vm426_vm3, %v740_v12, %v423_v4 }
 0x158   :  { %v483_v2 = vmul.f32 %v742_v26, %v482_v31  ;;  %v748_v55 = vpop.eup %747  ;;  %v515_v60 = vmul.f32 %v427_v53, %v323_v7  ;;  %v382_v42 = vsub.f32 1.5, %v381_v5 }
 0x159   :  { %v463_v15 = vmul.f32 %v744_v41, %v462_v11  ;;  %v489_v8 = vmul.f32 %v748_v55, %v1242_v46  ;;  %v750_v6 = vpop.eup %749  ;;  %vm495_vm11 = vweird.f32 %v748_v55  ;;  %v331_v46 = vsub.f32 %v921_v52, %v1181_v27 }
 0x15a   :  { %v487_v49 = vsel %vm486_vm5, %v742_v26, %v483_v2  ;;  %v533_v30 = vmul.f32 %v1045_v28, %v515_v60  ;;  %v554_v26 = vadd.f32 %v1087_v36, %v536_v45  ;;  %v499_v29 = vmul.f32 %v750_v6, %v1248_v9  ;;  %vm496_vm14 = vmor %vm494_vm12, %vm495_vm11 }
 0x15b   :  { %v521_v12 = vmul.f32 %v487_v49, %v329_v35  ;;  %v467_v22 = vsel %vm466_vm7, %v744_v41, %v463_v15  ;;  %v490_v25 = vmul.f32 %v748_v55, %v489_v8  ;;  %v383_v47 = vmul.f32 %v746_v23, %v382_v42 }
 0x15c   :  { %v519_v37 = vmul.f32 %v467_v22, %v327_v32  ;;  %v551_v58 = vadd.f32 %v1087_v36, %v533_v30  ;;  %v528_v35 = vmul.f32 %v1045_v28, %v510_v19  ;;  %v500_v3 = vmul.f32 %v750_v6, %v499_v29 }
 0x15d   :  { %v539_v16 = vmul.f32 %v1045_v28, %v521_v12  ;;  %v491_v41 = vmul.f32 0.5, %v490_v25  ;;  %v387_v20 = vsel %vm386_vm10, %v746_v23, %v383_v47  ;;  %vm505_vm13 = vweird.f32 %v750_v6 }
 0x15e   :  { %v537_v24 = vmul.f32 %v1045_v28, %v519_v37  ;;  %v681_v32 = vpack.c.bf16 %v551_v58, %v550_v13  ;;  %v511_v39 = vmul.f32 %v387_v20, %v319_v21  ;;  %v501_v0 = vmul.f32 0.5, %v500_v3  ;;  %vm506_vm0 = vmor %vm504_vm15, %vm505_vm13 }
 0x15f   :  { %v557_v17 = vadd.f32 %v1087_v36, %v539_v16  ;;  %v492_v50 = vsub.f32 1.5, %v491_v41 }
 0x160   :  { %v555_v7 = vadd.f32 %v1087_v36, %v537_v24  ;;  %705 = vst [vmem:[#allocation2 + $0x18] sm:$0xff] %v681_v32   ;;  %v529_v54 = vmul.f32 %v1045_v28, %v511_v39  ;;  %v502_v51 = vsub.f32 1.5, %v501_v0 }
 0x161   :  { %v696_v34 = vpack.c.bf16 %v557_v17, %v1208_v59  ;;  %v493_v62 = vmul.f32 %v748_v55, %v492_v50  ;;  %v546_v59 = vadd.f32 %v1087_v36, %v528_v35 }
 0x162   :  { %v691_v10 = vpack.c.bf16 %v555_v7, %v554_v26  ;;  %v547_v48 = vadd.f32 %v1087_v36, %v529_v54  ;;  %v503_v21 = vmul.f32 %v750_v6, %v502_v51 }
 0x163   :  { %708 = vst [vmem:[#allocation2 + $0x30] sm:$0xff] %v696_v34   ;;  %v497_v14 = vsel %vm496_vm14, %v748_v55, %v493_v62 }
 0x164   :  { %707 = vst [vmem:[#allocation2 + $0x28] sm:$0xff] %v691_v10   ;;  %v522_v44 = vmul.f32 %v497_v14, %v330_v61  ;;  %v671_v23 = vpack.c.bf16 %v547_v48, %v546_v59  ;;  %v507_v43 = vsel %vm506_vm0, %v750_v6, %v503_v21 }
 0x165   :  { %v523_v33 = vmul.f32 %v507_v43, %v331_v46 }
 0x166   :  { %v540_v38 = vmul.f32 %v1045_v28, %v522_v44  ;;  %703 = vst [vmem:[#allocation2 + $0x8] sm:$0xff] %v671_v23  }
 0x167   :  { %v541_v40 = vmul.f32 %v1045_v28, %v523_v33 }
 0x168   :  { %v558_v9 = vadd.f32 %v1087_v36, %v540_v38 }
 0x169   :  { %v559_v52 = vadd.f32 %v1087_v36, %v541_v40 }
 0x16b   :  { %v701_v27 = vpack.c.bf16 %v559_v52, %v558_v9 }
 0x16d   :  { %709 = vst [vmem:[#allocation2 + $0x38] sm:$0xff] %v701_v27  }
 0x16e   :  { %604 = dma.vmem_to_hbm [thread:$0]  %s597_s7, 1024, %s599_s10, [#allocation3], %s778_s11, %s778_s11, %s779_s12  }
 0x16f   :  { %775 = dma.done.wait [#allocation3], 1024  }
 0x170   :  { %776 = vsyncadd [#allocation3], 4294966272 }
 0x171   :  { %609 = vsyncpa [#allocation3], 1 }

</bundles_post_ra>
